<compile_context>
chip_gen: v7x
topology: tpu7x:2x2x1
jax: 0.10.0
libtpu: 0.0.40
codegen_flags: <defaults>
</compile_context>

<pallas_src>
import jax
import jax.numpy as jnp
from jax.experimental import pallas as pl
from jax.experimental.pallas import tpu as pltpu


def _roundup(x, m):
    return ((x + m - 1) // m) * m


def _subgraph_kernel(x_ref, wT_ref, b_ref, g_ref, beta_ref, feat_ref, mp_ref):
    # x_ref:    (TB, V, L)   TB batch elements
    # wT_ref:   (L, L)       Linear weight, transposed to (in, out)
    # b_ref:    (1, L)       Linear bias
    # g_ref:    (1, L)       LayerNorm gamma
    # beta_ref: (1, L)       LayerNorm beta
    # feat_ref: (TB, V, L)   ReLU(LayerNorm(Linear(x)))
    # mp_ref:   (TB, 1, L)   max over the node axis (written once, not V times)
    TB, V, L = x_ref.shape

    # Flatten batch*nodes into a tall matmul M dimension (layout-trivial for
    # V a multiple of 8; lanes / last dim unchanged).
    x = x_ref[...].reshape(TB * V, L)

    # Linear: x @ W^T + b   (MXU, f32 accumulation)
    h = jnp.dot(x, wT_ref[...], preferred_element_type=jnp.float32)
    h = h + b_ref[...]                                     # broadcast (1, L)

    # LayerNorm over the feature axis, eps = 1e-5 (PyTorch default).
    # Two-pass statistics (robust against cancellation for large means).
    mean = jnp.mean(h, axis=-1, keepdims=True)
    c = h - mean
    var = jnp.mean(c * c, axis=-1, keepdims=True)
    hn = c * jax.lax.rsqrt(var + 1e-5)
    hn = hn * g_ref[...] + beta_ref[...]

    # ReLU
    feat = jnp.maximum(hn, 0.0)                            # (TB*V, L)
    feat3 = feat.reshape(TB, V, L)

    # Two full-block stores; the V-duplicated broadcast never hits HBM.
    feat_ref[...] = feat3
    mp_ref[...] = jnp.max(feat3, axis=1, keepdims=True)    # (TB, 1, L)


def _has_two_tensorcores():
    # v7x has 2 TensorCores per chip; v5e/v6e have 1.
    try:
        return "v7" in jax.devices()[0].device_kind.lower()
    except Exception:
        return False


def _vmem_limit_bytes():
    # Keep the scoped limit <= min(32 MiB, physical VMEM / 2) so the same
    # setting is safe on v7x (64 MiB/TC) as well as v5e/v6e (128 MiB).
    cap = 64 * 1024 * 1024
    try:
        cap = int(pltpu.get_tpu_info().vmem_capacity_bytes)
    except Exception:
        pass
    return min(32 * 1024 * 1024, cap // 2)


def subgraph_layer(x, w, b, gamma, beta, *,
                   vmem_budget_bytes=8 * 1024 * 1024, max_tb=None):
    """x: [B, V, L] float32;  w: [L, L] (out, in);  b/gamma/beta: [L]."""
    x = jnp.asarray(x, jnp.float32)
    B, V, L = x.shape
    wT = jnp.asarray(w, jnp.float32).T                     # (in, out)
    b2 = jnp.asarray(b, jnp.float32).reshape(1, L)
    g2 = jnp.asarray(gamma, jnp.float32).reshape(1, L)
    be2 = jnp.asarray(beta, jnp.float32).reshape(1, L)

    # ---- VMEM sizing with the *padded* footprint (lanes round up to 128,
    # the (1, L) mp tile rounds up to 8 sublanes), double-buffered blocks,
    # intermediates, and the resident weight/param tiles counted once. ----
    lane_bytes = 4
    L_pad = _roundup(L, 128)
    blk_in = V * L_pad * lane_bytes                        # x block / batch elem
    blk_feat = V * L_pad * lane_bytes                      # feat out block
    blk_mp = 8 * L_pad * lane_bytes                        # (1, L) tile -> (8, L_pad)
    intermediates = 3 * V * L_pad * lane_bytes             # h, centered, feat
    per_b = 2 * (blk_in + blk_feat + blk_mp) + intermediates
    resident = (L_pad * L_pad + 3 * 8 * L_pad) * lane_bytes  # wT + b/gamma/beta
    avail = max(vmem_budget_bytes - resident, per_b)
    tb = max(1, min(B, avail // per_b, 512))
    if max_tb is not None:
        tb = max(1, min(tb, int(max_tb)))

    # ---- Grid policy: single-TC chips (v5e/v6e) want the fewest steps.
    # Only split for v7x's two TensorCores, and only when each half has
    # meaningful work; keep the step count even so no TC idles on a tail. ----
    two_tc = _has_two_tensorcores()
    if two_tc and B >= 2 and B * V >= 2048:
        tb = min(tb, pl.cdiv(B, 2))
    grid_b = pl.cdiv(B, tb)
    if two_tc and grid_b > 1 and grid_b % 2 == 1:
        grid_b += 1                                        # extra padded step
    b_pad = grid_b * tb
    if b_pad != B:
        # Padded rows run harmless (finite) LN math and are sliced off below.
        x = jnp.pad(x, ((0, b_pad - B), (0, 0), (0, 0)))

    feat_pad, mp_pad = pl.pallas_call(
        _subgraph_kernel,
        out_shape=(
            jax.ShapeDtypeStruct((b_pad, V, L), jnp.float32),
            jax.ShapeDtypeStruct((b_pad, 1, L), jnp.float32),
        ),
        grid_spec=pltpu.PrefetchScalarGridSpec(
            num_scalar_prefetch=0,
            grid=(grid_b,),
            in_specs=[
                pl.BlockSpec((tb, V, L), lambda i: (i, 0, 0)),
                pl.BlockSpec((L, L), lambda i: (0, 0)),     # resident, no re-DMA
                pl.BlockSpec((1, L), lambda i: (0, 0)),
                pl.BlockSpec((1, L), lambda i: (0, 0)),
                pl.BlockSpec((1, L), lambda i: (0, 0)),
            ],
            out_specs=[
                pl.BlockSpec((tb, V, L), lambda i: (i, 0, 0)),
                pl.BlockSpec((tb, 1, L), lambda i: (i, 0, 0)),
            ],
        ),
        compiler_params=pltpu.CompilerParams(
            dimension_semantics=("parallel",),
            vmem_limit_bytes=_vmem_limit_bytes(),
        ),
    )(x, wT, b2, g2, be2)

    feat = feat_pad[:B]
    mp = mp_pad[:B]
    # Assemble the module's [B, V, 2L] contract outside the kernel; XLA fuses
    # this broadcast+concat with the consumer, while the kernel only wrote
    # (V+1)*L instead of 2*V*L values per batch element.
    return jnp.concatenate([jnp.broadcast_to(mp, (B, V, L)), feat], axis=-1)


def subgraph_layer_ref(x, w, b, gamma, beta):
    """Pure-JAX reference mirroring the PyTorch forward."""
    h = jnp.einsum("bvl,ol->bvo", x, w) + b
    mean = jnp.mean(h, axis=-1, keepdims=True)
    var = jnp.mean((h - mean) ** 2, axis=-1, keepdims=True)
    hn = (h - mean) / jnp.sqrt(var + 1e-5) * gamma + beta
    feat = jnp.maximum(hn, 0.0)
    mp = jnp.max(feat, axis=1, keepdims=True)              # max over vNumber
    mp = jnp.broadcast_to(mp, feat.shape)
    return jnp.concatenate([mp, feat], axis=-1)


if __name__ == "__main__":
    L = 32
    V = 8
    key = jax.random.PRNGKey(0)
    kw, kb, kg, kbe, kx1, kx2 = jax.random.split(key, 6)

    # Deterministic synthetic parameters (Linear(L, L) + LayerNorm(L)).
    # TODO(synk): the referenced MLP module is assumed to be fc -> LayerNorm -> ReLU.
    w = jax.random.normal(kw, (L, L), dtype=jnp.float32) * (1.0 / jnp.sqrt(L))
    b = jax.random.normal(kb, (L,), dtype=jnp.float32) * 0.1
    gamma = 1.0 + 0.1 * jax.random.normal(kg, (L,), dtype=jnp.float32)
    beta = 0.1 * jax.random.normal(kbe, (L,), dtype=jnp.float32)

    cases = [
        (2, kx1, None),   # single grid step
        (5, kx2, 2),      # forced tb=2 -> multi-step grid + batch padding path
    ]
    for B, kk, forced_tb in cases:
        x = jax.random.normal(kk, (B, V, L), dtype=jnp.float32)
        y = jax.block_until_ready(
            subgraph_layer(x, w, b, gamma, beta, max_tb=forced_tb))
        y_ref = subgraph_layer_ref(x, w, b, gamma, beta)
        assert y.shape == (B, V, 2 * L), y.shape
        err = float(jnp.max(jnp.abs(y - y_ref)))
        assert jnp.allclose(y, y_ref, atol=1e-4, rtol=1e-4), err

    print("KERNEL_OK")
</pallas_src>

<mosaic_0001>
module attributes {stable_mosaic.version = 11 : i64} {
  func.func @_subgraph_kernel(%arg0: i32, %arg1: memref<2x8x32xf32, #tpu.memory_space<vmem>>, %arg2: memref<32x32xf32, #tpu.memory_space<vmem>>, %arg3: memref<1x32xf32, #tpu.memory_space<vmem>>, %arg4: memref<1x32xf32, #tpu.memory_space<vmem>>, %arg5: memref<1x32xf32, #tpu.memory_space<vmem>>, %arg6: memref<2x8x32xf32, #tpu.memory_space<vmem>>, %arg7: memref<2x1x32xf32, #tpu.memory_space<vmem>>) attributes {dimension_semantics = [#tpu.dimension_semantics<parallel>], iteration_bounds = array<i64: 1>, scalar_prefetch = 0 : i64, scratch_operands = 0 : i64, tpu.core_type = #tpu.core_type<tc>, window_params = [{transform_indices = @transform_0, window_bounds = array<i64: 2, 8, 32>}, {pipeline_mode = #tpu.pipeline_mode<synchronous>, transform_indices = @transform_1, window_bounds = array<i64: 32, 32>}, {pipeline_mode = #tpu.pipeline_mode<synchronous>, transform_indices = @transform_2, window_bounds = array<i64: 1, 32>}, {pipeline_mode = #tpu.pipeline_mode<synchronous>, transform_indices = @transform_3, window_bounds = array<i64: 1, 32>}, {pipeline_mode = #tpu.pipeline_mode<synchronous>, transform_indices = @transform_4, window_bounds = array<i64: 1, 32>}, {transform_indices = @transform_5, window_bounds = array<i64: 2, 8, 32>}, {transform_indices = @transform_6, window_bounds = array<i64: 2, 1, 32>}]} {
    %c0 = arith.constant 0 : index
    %c0_0 = arith.constant 0 : index
    %c0_1 = arith.constant 0 : index
    %0 = vector.load %arg1[%c0, %c0_0, %c0_1] : memref<2x8x32xf32, #tpu.memory_space<vmem>>, vector<2x8x32xf32>
    %1 = vector.shape_cast %0 : vector<2x8x32xf32> to vector<16x32xf32>
    %c0_2 = arith.constant 0 : index
    %c0_3 = arith.constant 0 : index
    %2 = vector.load %arg2[%c0_2, %c0_3] : memref<32x32xf32, #tpu.memory_space<vmem>>, vector<32x32xf32>
    %cst = arith.constant dense<0.000000e+00> : vector<16x32xf32>
    %3 = tpu.matmul %1, %2, %cst {dimension_numbers = #tpu.dot_dimension_numbers<[1], [0], [0], [1], [0, 0, 1, 1], [], []>} : vector<16x32xf32>, vector<32x32xf32>, vector<16x32xf32> -> vector<16x32xf32>
    %c0_4 = arith.constant 0 : index
    %c0_5 = arith.constant 0 : index
    %4 = vector.load %arg3[%c0_4, %c0_5] : memref<1x32xf32, #tpu.memory_space<vmem>>, vector<1x32xf32>
    %5 = vector.broadcast %4 : vector<1x32xf32> to vector<16x32xf32>
    %6 = arith.addf %3, %5 : vector<16x32xf32>
    %cst_6 = arith.constant dense<0.000000e+00> : vector<16xf32>
    %7 = vector.multi_reduction <add>, %6, %cst_6 [1] : vector<16x32xf32> to vector<16xf32>
    %8 = vector.shape_cast %7 : vector<16xf32> to vector<16x1xf32>
    %cst_7 = arith.constant 3.200000e+01 : f32
    %9 = vector.broadcast %cst_7 : f32 to vector<16x1xf32>
    %10 = arith.divf %8, %9 : vector<16x1xf32>
    %11 = vector.broadcast %10 : vector<16x1xf32> to vector<16x32xf32>
    %12 = arith.subf %6, %11 : vector<16x32xf32>
    %13 = arith.mulf %12, %12 : vector<16x32xf32>
    %cst_8 = arith.constant dense<0.000000e+00> : vector<16xf32>
    %14 = vector.multi_reduction <add>, %13, %cst_8 [1] : vector<16x32xf32> to vector<16xf32>
    %15 = vector.shape_cast %14 : vector<16xf32> to vector<16x1xf32>
    %cst_9 = arith.constant 3.200000e+01 : f32
    %16 = vector.broadcast %cst_9 : f32 to vector<16x1xf32>
    %17 = arith.divf %15, %16 : vector<16x1xf32>
    %cst_10 = arith.constant 9.99999974E-6 : f32
    %18 = vector.broadcast %cst_10 : f32 to vector<16x1xf32>
    %19 = arith.addf %17, %18 : vector<16x1xf32>
    %20 = math.rsqrt %19 : vector<16x1xf32>
    %21 = vector.broadcast %20 : vector<16x1xf32> to vector<16x32xf32>
    %22 = arith.mulf %12, %21 : vector<16x32xf32>
    %c0_11 = arith.constant 0 : index
    %c0_12 = arith.constant 0 : index
    %23 = vector.load %arg4[%c0_11, %c0_12] : memref<1x32xf32, #tpu.memory_space<vmem>>, vector<1x32xf32>
    %24 = vector.broadcast %23 : vector<1x32xf32> to vector<16x32xf32>
    %25 = arith.mulf %22, %24 : vector<16x32xf32>
    %c0_13 = arith.constant 0 : index
    %c0_14 = arith.constant 0 : index
    %26 = vector.load %arg5[%c0_13, %c0_14] : memref<1x32xf32, #tpu.memory_space<vmem>>, vector<1x32xf32>
    %27 = vector.broadcast %26 : vector<1x32xf32> to vector<16x32xf32>
    %28 = arith.addf %25, %27 : vector<16x32xf32>
    %cst_15 = arith.constant 0.000000e+00 : f32
    %29 = vector.broadcast %cst_15 : f32 to vector<16x32xf32>
    %30 = arith.maximumf %28, %29 : vector<16x32xf32>
    %31 = vector.shape_cast %30 : vector<16x32xf32> to vector<2x8x32xf32>
    %c0_16 = arith.constant 0 : index
    %c0_17 = arith.constant 0 : index
    %c0_18 = arith.constant 0 : index
    %32 = vector.load %arg6[%c0_16, %c0_17, %c0_18] : memref<2x8x32xf32, #tpu.memory_space<vmem>>, vector<2x8x32xf32>
    tpu.vector_store %arg6[%c0_16, %c0_17, %c0_18], %31 {strides = array<i32>} : memref<2x8x32xf32, #tpu.memory_space<vmem>>, vector<2x8x32xf32>,
    %cst_19 = arith.constant dense<0xFF800000> : vector<2x32xf32>
    %33 = vector.multi_reduction <maximumf>, %31, %cst_19 [1] : vector<2x8x32xf32> to vector<2x32xf32>
    %34 = vector.shape_cast %33 : vector<2x32xf32> to vector<2x1x32xf32>
    %c0_20 = arith.constant 0 : index
    %c0_21 = arith.constant 0 : index
    %c0_22 = arith.constant 0 : index
    %35 = vector.load %arg7[%c0_20, %c0_21, %c0_22] : memref<2x1x32xf32, #tpu.memory_space<vmem>>, vector<2x1x32xf32>
    tpu.vector_store %arg7[%c0_20, %c0_21, %c0_22], %34 {strides = array<i32>} : memref<2x1x32xf32, #tpu.memory_space<vmem>>, vector<2x1x32xf32>,
    return
  }
  func.func @transform_0(%arg0: i32) -> (i32, i32, i32) {
    %c0_i32 = arith.constant 0 : i32
    %c0_i32_0 = arith.constant 0 : i32
    %c0_i32_1 = arith.constant 0 : i32
    return %arg0, %c0_i32, %c0_i32_0 : i32, i32, i32
  }
  func.func @transform_1(%arg0: i32) -> (i32, i32) {
    %c0_i32 = arith.constant 0 : i32
    %c0_i32_0 = arith.constant 0 : i32
    %c0_i32_1 = arith.constant 0 : i32
    return %c0_i32, %c0_i32_0 : i32, i32
  }
  func.func @transform_2(%arg0: i32) -> (i32, i32) {
    %c0_i32 = arith.constant 0 : i32
    %c0_i32_0 = arith.constant 0 : i32
    %c0_i32_1 = arith.constant 0 : i32
    return %c0_i32, %c0_i32_0 : i32, i32
  }
  func.func @transform_3(%arg0: i32) -> (i32, i32) {
    %c0_i32 = arith.constant 0 : i32
    %c0_i32_0 = arith.constant 0 : i32
    %c0_i32_1 = arith.constant 0 : i32
    return %c0_i32, %c0_i32_0 : i32, i32
  }
  func.func @transform_4(%arg0: i32) -> (i32, i32) {
    %c0_i32 = arith.constant 0 : i32
    %c0_i32_0 = arith.constant 0 : i32
    %c0_i32_1 = arith.constant 0 : i32
    return %c0_i32, %c0_i32_0 : i32, i32
  }
  func.func @transform_5(%arg0: i32) -> (i32, i32, i32) {
    %c0_i32 = arith.constant 0 : i32
    %c0_i32_0 = arith.constant 0 : i32
    %c0_i32_1 = arith.constant 0 : i32
    return %arg0, %c0_i32, %c0_i32_0 : i32, i32, i32
  }
  func.func @transform_6(%arg0: i32) -> (i32, i32, i32) {
    %c0_i32 = arith.constant 0 : i32
    %c0_i32_0 = arith.constant 0 : i32
    %c0_i32_1 = arith.constant 0 : i32
    return %arg0, %c0_i32, %c0_i32_0 : i32, i32, i32
  }
}

</mosaic_0001>

<bundles_post_ra>
// kernel: tpu_custom_call.1
= control target key start
LH: loop header
LB: loop body
LE: loop exit
PB: predicated region body
PF: predicated region fallthrough
CT: control target
= control target key end

     0   :  { %12 = vsyncpa [#allocation3], 0  ;;  %s504_s0 = inlined_call_operand.hbm [shape: f32[2,8,32], index: 0, kind: input, shape index: {}]   ;;  %s505_s1 = inlined_call_operand.hbm [shape: f32[32,32], index: 1, kind: input, shape index: {}]   ;;  %s506_s2 = inlined_call_operand.vmem [shape: f32[1,32], index: 2, kind: input, shape index: {}]   ;;  %s507_s3 = inlined_call_operand.vmem [shape: f32[1,32], index: 3, kind: input, shape index: {}]   ;;  %s508_s4 = inlined_call_operand.vmem [shape: f32[1,32], index: 4, kind: input, shape index: {}]   ;;  %s509_s5 = inlined_call_operand.hbm [shape: f32[2,8,32], index: 5, kind: output, shape index: {0}]   ;;  %s510_s6 = inlined_call_operand.hbm [shape: f32[2,1,32], index: 6, kind: output, shape index: {1}]  }
   0x1   :  { %13 = vsyncpa [#allocation6], 0 }
   0x2   :  { %14 = vsyncpa [#allocation4], 0 }
   0x3   :  { %15 = vsyncpa [#allocation9], 0  ;;  %s385_s21 = smov [#allocation2]   ;;  %s289_s25 = scalar_lea.hbm %s504_s0, 256 }
   0x4   :  { %s21_s22 = sshll.u32 %s385_s21, 4  ;;  %p290_p0 = scmp.ne.s32.totalorder %s504_s0, %s289_s25  ;;  %s22_s22 = int_to_ptr.vmem [resolvable:$true] %s21_s22 }
   0x5   :  { %p293_p1 = scmp.lt.u32.totalorder %s289_s25, %s504_s0 }
   0x7   :  { %p295_p2 = pnand %p293_p1, %p290_p0 }
   0x9   :  { %298 = shalt.err (!%p295_p2)
}
   0xa   :  { %s299_s30 = scalar_lea.vmem %s22_s22, 256  ;;  %p304_p4 = scmp.lt.s32.totalorder %s22_s22, %s22_s22 }
   0xb   :  { %p300_p3 = scmp.ne.s32.totalorder %s22_s22, %s299_s30  ;;  %p305_p5 = scmp.lt.s32.totalorder %s299_s30, %s299_s30 }
   0xd   :  { %p306_p6 = por %p305_p5, %p304_p4 }
   0xf   :  { %p307_p7 = pnand %p306_p6, %p300_p3 }
  0x11   :  { %310 = shalt.err (!%p307_p7)
}
  0x12   :  { %s386_s7 = smov 128   ;;  %s387_s8 = smov 8  }
  0x13   :  { %27 = dma.hbm_to_vmem [thread:$0]  %s504_s0, 256, %s22_s22, [#allocation3], %s386_s7, %s386_s7, %s387_s8  }
  0x14   :  { %s388_s11 = smov [#allocation5]   ;;  %s311_s15 = scalar_lea.hbm %s505_s1, 512 }
  0x15   :  { %s33_s12 = sshll.u32 %s388_s11, 4  ;;  %p312_p8 = scmp.ne.s32.totalorder %s505_s1, %s311_s15  ;;  %s34_s12 = int_to_ptr.vmem [resolvable:$true] %s33_s12 }
  0x16   :  { %p315_p9 = scmp.lt.u32.totalorder %s311_s15, %s505_s1 }
  0x18   :  { %p317_p10 = pnand %p315_p9, %p312_p8 }
  0x1a   :  { %320 = shalt.err (!%p317_p10)
}
  0x1b   :  { %s321_s20 = scalar_lea.vmem %s34_s12, 512  ;;  %p326_p12 = scmp.lt.s32.totalorder %s34_s12, %s34_s12 }
  0x1c   :  { %p322_p11 = scmp.ne.s32.totalorder %s34_s12, %s321_s20  ;;  %p327_p13 = scmp.lt.s32.totalorder %s321_s20, %s321_s20 }
  0x1e   :  { %p328_p0 = por %p327_p13, %p326_p12 }
  0x20   :  { %p329_p1 = pnand %p328_p0, %p322_p11 }
  0x22   :  { %332 = shalt.err (!%p329_p1)
}
  0x23   :  { %39 = dma.hbm_to_vmem [thread:$0]  %s505_s1, 512, %s34_s12, [#allocation6], %s386_s7, %s386_s7, %s387_s8  }
  0x24   :  { %377 = dma.done.wait [#allocation3], 256  }
  0x25   :  { %378 = vsyncadd [#allocation3], 4294967040 }
  0x26   :  { %379 = dma.done.wait [#allocation6], 512  }
  0x27   :  { %380 = vsyncadd [#allocation6], 4294966784  ;;  %vm65_vm0 = vcmask 261120   ;;  %v54_v0 = vld [vmem:[#allocation5] sm:$0xff]  ;;  %v55_v1 = vld [vmem:[#allocation5 + $0x8] sm:$0xff]  ;;  %s389_s26 = smov [#allocation7]  }
  0x28   :  { %v56_v2 = vld [vmem:[#allocation5 + $0x10] sm:$0xff]  ;;  %v269_v3 = vpack.c.bf16 %v55_v1, %v54_v0  ;;  %v57_v4 = vld [vmem:[#allocation5 + $0x18] sm:$0xff]  ;;  %s218_s27 = sshll.u32 %s389_s26, 4  ;;  %s219_s27 = int_to_ptr.vmem [resolvable:$true] %s218_s27 }
  0x29   :  { %v52_v5 = vld [vmem:[#allocation2] sm:$0xff]  ;;  %v273_v6 = vpack.c.bf16 %v57_v4, %v56_v2  ;;  %v53_v7 = vld [vmem:[#allocation2 + $0x8] sm:$0xff]  ;;  %p338_p3 = scmp.lt.s32.totalorder %s219_s27, %s219_s27 }
  0x2a   :  { %266 = vmatprep.mubr.msk.f32.mxu0 %vm65_vm0, %v52_v5  ;;  %270 = vmatprep.subr.bf16.mxu0 %v269_v3  ;;  %v247_v8 = vld [vmem:[%s506_s2] ss:$0 sm:$0xff] }
  0x2b   :  { %272 = vmatpush3.bf16.msra.mxu0 %v269_v3  ;;  %v250_v32 = vld [vmem:[%s507_s3] ss:$0 sm:$0xff]  ;;  %s333_s3 = scalar_lea.vmem %s219_s27, 256 }
  0x2c   :  { %274 = vmatprep.subr.bf16.mxu0 %v273_v6  ;;  %v251_v34 = vld [vmem:[%s508_s4] ss:$0 sm:$0xff]  ;;  %p334_p2 = scmp.ne.s32.totalorder %s219_s27, %s333_s3  ;;  %p339_p4 = scmp.lt.s32.totalorder %s333_s3, %s333_s3 }
  0x2e   :  { %p340_p5 = por %p339_p4, %p338_p3 }
  0x2f   :  { %276 = vmatpush3.bf16.msra.mxu0 %v273_v6 }
  0x30   :  { %p341_p6 = pnand %p340_p5, %p334_p2 }
  0x32   :  { %267 = vmatmul.mubr.msk.f32.vlgmr.msra.gmra.mrb[0].mxu0 %vm65_vm0, %v53_v7 }
 0x105   :  { %v268_v9 = vpop.f32.mrb[0].mxu0 }
 0x106   :  { %v138_v10 = vpop.f32.mrb[1].mxu0  ;;  %v144_v12 = vadd.f32 %v268_v9, %v247_v8 }
 0x107   :  { %v139_v11 = vadd.f32 %v247_v8, %v138_v10 }
 0x108   :  { %v150_v14 = vsel %vm65_vm0, %v144_v12, 0.0 }
 0x109   :  { %v147_v13 = vsel %vm65_vm0, %v139_v11, 0.0 }
 0x10a   :  { %148 = vadd.xlane.f32.xlu0 %v147_v13 }
 0x10e   :  { %151 = vadd.xlane.f32.xlu0 %v150_v14 }
 0x197   :  { %v149_v15 = vpop.xlane.xlu0 %148 }
 0x198   :  { %v154_v16 = vmul.f32 0.03125, %v149_v15 }
 0x19a   :  { %v156_v17 = vsub.f32 %v139_v11, %v154_v16 }
 0x19b   :  { %v152_v18 = vpop.xlane.xlu0 %151 }
 0x19c   :  { %v155_v19 = vmul.f32 0.03125, %v152_v18  ;;  %v158_v20 = vmul.f32 %v156_v17, %v156_v17 }
 0x19e   :  { %v157_v21 = vsub.f32 %v144_v12, %v155_v19  ;;  %v160_v22 = vsel %vm65_vm0, %v158_v20, 0.0 }
 0x19f   :  { %161 = vadd.xlane.f32.xlu1 %v160_v22 }
 0x1a0   :  { %v159_v23 = vmul.f32 %v157_v21, %v157_v21 }
 0x1a2   :  { %v163_v24 = vsel %vm65_vm0, %v159_v23, 0.0 }
 0x1a3   :  { %164 = vadd.xlane.f32.xlu1 %v163_v24 }
 0x22c   :  { %v162_v25 = vpop.xlane.xlu1 %161 }
 0x22d   :  { %v166_v26 = vmul.f32 0.03125, %v162_v25 }
 0x22f   :  { %v168_v27 = vadd.f32 1e-05, %v166_v26 }
 0x230   :  { %v165_v28 = vpop.xlane.xlu1 %164 }
 0x231   :  { %285 = vrsqrt.f32 %v168_v27  ;;  %v167_v29 = vmul.f32 0.03125, %v165_v28 }
 0x233   :  { %v169_v30 = vadd.f32 1e-05, %v167_v29 }
 0x235   :  { %287 = vrsqrt.f32 %v169_v30 }
 0x23b   :  { %v286_v31 = vpop.eup %285 }
 0x23c   :  { %v172_v33 = vmul.f32 %v286_v31, %v156_v17 }
 0x23e   :  { %v181_v35 = vmul.f32 %v250_v32, %v172_v33 }
 0x23f   :  { %v288_v36 = vpop.eup %287 }
 0x240   :  { %v173_v37 = vmul.f32 %v288_v36, %v157_v21  ;;  %v190_v38 = vadd.f32 %v251_v34, %v181_v35 }
 0x242   :  { %v182_v39 = vmul.f32 %v250_v32, %v173_v37  ;;  %v192_v40 = vmax.f32 %v190_v38, 0.0 }
 0x244   :  { %v191_v41 = vadd.f32 %v251_v34, %v182_v39  ;;  %194 = vst.msk [vmem:[#allocation7] sm:$0xff] %vm65_vm0, %v192_v40  ;;  %v196_v42 = vsel %vm65_vm0, %v192_v40, -inf }
 0x245   :  { %v197_v43 = vrot.slane %v196_v42, 4 }
 0x246   :  { %v193_v44 = vmax.f32 %v191_v41, 0.0 }
 0x247   :  { %v198_v45 = vmax.f32 %v196_v42, %v197_v43 }
 0x248   :  { %195 = vst.msk [vmem:[#allocation7 + $0x8] sm:$0xff] %vm65_vm0, %v193_v44  ;;  %v203_v46 = vsel %vm65_vm0, %v193_v44, -inf }
 0x249   :  { %v199_v47 = vrot.slane %v198_v45, 2  ;;  %v204_v48 = vrot.slane %v203_v46, 4 }
 0x24a   :  { %344 = shalt.err (!%p341_p6)
}
 0x24b   :  { %s345_s29 = scalar_lea.hbm %s509_s5, 256 }
 0x24c   :  { %p346_p7 = scmp.ne.s32.totalorder %s509_s5, %s345_s29  ;;  %p349_p8 = scmp.lt.u32.totalorder %s345_s29, %s509_s5 }
 0x24e   :  { %p351_p9 = pnand %p349_p8, %p346_p7 }
 0x250   :  { %354 = shalt.err (!%p351_p9)
}
 0x251   :  { %224 = dma.vmem_to_hbm [thread:$0]  %s219_s27, 256, %s509_s5, [#allocation4], %s386_s7, %s386_s7, %s387_s8   ;;  %v200_v49 = vmax.f32 %v198_v45, %v199_v47  ;;  %v205_v50 = vmax.f32 %v203_v46, %v204_v48  ;;  %vm210_vm1 = vcmask 253952  }
 0x252   :  { %s390_s14 = smov [#allocation8]  }
 0x253   :  { %v206_v51 = vrot.slane %v205_v50, 2  ;;  %v201_v52 = vrot.slane %v200_v49, 1  ;;  %s230_s15 = sshll.u32 %s390_s14, 4  ;;  %s231_s15 = int_to_ptr.vmem [resolvable:$true] %s230_s15 }
 0x254   :  { %s355_s16 = scalar_lea.vmem %s231_s15, 32  ;;  %p360_p11 = scmp.lt.s32.totalorder %s231_s15, %s231_s15 }
 0x255   :  { %v207_v53 = vmax.f32 %v205_v50, %v206_v51  ;;  %v202_v54 = vmax.f32 %v200_v49, %v201_v52  ;;  %p356_p10 = scmp.ne.s32.totalorder %s231_s15, %s355_s16  ;;  %p361_p12 = scmp.lt.s32.totalorder %s355_s16, %s355_s16 }
 0x257   :  { %v208_v55 = vrot.slane %v207_v53, 1  ;;  %211 = vst.msk [vmem:[#allocation8] sm:$0x1] %vm210_vm1, %v202_v54  ;;  %p362_p13 = por %p361_p12, %p360_p11 }
 0x259   :  { %v209_v56 = vmax.f32 %v207_v53, %v208_v55  ;;  %p363_p0 = pnand %p362_p13, %p356_p10 }
 0x25b   :  { %212 = vst.msk [vmem:[#allocation8 + $0x1] sm:$0x1] %vm210_vm1, %v209_v56 }
 0x25c   :  { %366 = shalt.err (!%p363_p0)
}
 0x25d   :  { %s367_s8 = scalar_lea.hbm %s510_s6, 32 }
 0x25e   :  { %p368_p1 = scmp.ne.s32.totalorder %s510_s6, %s367_s8  ;;  %p371_p2 = scmp.lt.u32.totalorder %s367_s8, %s510_s6 }
 0x260   :  { %p373_p3 = pnand %p371_p2, %p368_p1 }
 0x262   :  { %376 = shalt.err (!%p373_p3)
}
 0x263   :  { %s391_s0 = smov 16   ;;  %s392_s21 = smov 1  }
 0x264   :  { %236 = dma.vmem_to_hbm [thread:$0]  %s231_s15, 32, %s510_s6, [#allocation9], %s391_s0, %s391_s0, %s392_s21  }
 0x265   :  { %381 = dma.done.wait [#allocation4], 256  }
 0x266   :  { %382 = vsyncadd [#allocation4], 4294967040 }
 0x267   :  { %383 = dma.done.wait [#allocation9], 32  }
 0x268   :  { %384 = vsyncadd [#allocation9], 4294967264 }
 0x269   :  { %243 = vsyncpa [#allocation3], 1 }
 0x26a   :  { %244 = vsyncpa [#allocation6], 1 }
 0x26b   :  { %245 = vsyncpa [#allocation4], 1 }
 0x26c   :  { %246 = vsyncpa [#allocation9], 1 }

</bundles_post_ra>
